<compile_context>
chip_gen: v7x
topology: tpu7x:2x2x1
jax: 0.10.0
libtpu: 0.0.40
codegen_flags: <defaults>
</compile_context>

<pallas_src>
import functools

import jax
import jax.numpy as jnp
from jax.experimental import pallas as pl
from jax.experimental.pallas import tpu as pltpu

_LANES = 128                              # TPU vreg lane width
_DEFAULT_BLOCK_BYTES = 2 * 1024 * 1024    # per-array block target (~2 MiB)


def _depthnorm_kernel(x_ref, o_ref, *, max_depth, min_depth, clamp_max_before_scale):
    # x_ref / o_ref: (4, tile_l) lane-dense VMEM tiles (channels x flat pixels).
    x = x_ref[...]
    d = jnp.maximum(x, jnp.asarray(min_depth, x.dtype))
    if clamp_max_before_scale:
        d = jnp.minimum(d, jnp.asarray(max_depth, x.dtype))
    d = d / jnp.asarray(max_depth, x.dtype)
    # One full, unmasked store: keep RGB channels (0..2), use normalized depth
    # on channel 3. The redundant max/min/div on RGB lanes rides in VALU slack.
    ch = jax.lax.broadcasted_iota(jnp.int32, x.shape, dimension=0)
    o_ref[...] = jnp.where(ch == 3, d, x)


def _depth_norm_jnp(image, max_depth, clamp_max_before_scale, min_depth):
    """Plain fused-elementwise reference / small-input fast path."""
    color = image[:3]
    depth = jnp.maximum(image[3:4], jnp.asarray(min_depth, image.dtype))
    if clamp_max_before_scale:
        depth = jnp.minimum(depth, jnp.asarray(max_depth, image.dtype))
    depth = depth / jnp.asarray(max_depth, image.dtype)
    return jnp.concatenate([color, depth], axis=0)


def depth_norm(image: jax.Array,
               max_depth: float,
               clamp_max_before_scale: bool = False,
               min_depth: float = 0.01,
               *,
               block_bytes: int = _DEFAULT_BLOCK_BYTES,
               min_pallas_bytes: int = 64 * 1024) -> jax.Array:
    """Pallas equivalent of DepthNorm.forward for a (4, H, W) input."""
    if max_depth <= 0.0:
        raise ValueError("max_depth must be > 0; got %.2f" % max_depth)
    C, H, W = image.shape
    if C != 4:
        raise ValueError(
            f"This transform is for 4 channel RGBD input only; got {image.shape}")

    L = H * W
    itemsize = image.dtype.itemsize
    nbytes = C * L * itemsize

    # Tiny / sub-lane inputs: XLA's fused elementwise op beats kernel-launch
    # overhead (there is no MXU work to win back). The demo forces Pallas.
    if L < _LANES or nbytes < min_pallas_bytes:
        return _depth_norm_jnp(image, max_depth, clamp_max_before_scale, min_depth)

    # ---- block sizing (lane-dense, generation-safe) -------------------------
    # Per-channel tile length (multiple of 128 lanes) targeting ~block_bytes.
    max_tile = max(_LANES, (block_bytes // (C * itemsize)) // _LANES * _LANES)
    n_blocks = pl.cdiv(L, max_tile)
    if L >= 2 * _LANES:
        n_blocks = max(n_blocks, 2)          # >=2 parallel steps: megacore / 2 TCs
    tile_l = pl.cdiv(pl.cdiv(L, n_blocks), _LANES) * _LANES
    grid = (pl.cdiv(L, tile_l),)             # boundary block masked by Pallas

    kernel = functools.partial(
        _depthnorm_kernel,
        max_depth=float(max_depth),
        min_depth=float(min_depth),
        clamp_max_before_scale=bool(clamp_max_before_scale),
    )

    x2 = image.reshape(C, L)                  # contiguous -> free reshape
    out2 = pl.pallas_call(
        kernel,
        out_shape=jax.ShapeDtypeStruct((C, L), image.dtype),
        grid=grid,
        in_specs=[pl.BlockSpec((C, tile_l), lambda i: (0, i))],
        out_specs=pl.BlockSpec((C, tile_l), lambda i: (0, i)),
        compiler_params=pltpu.CompilerParams(
            dimension_semantics=("parallel",),
            # ~8 MiB live (in+out, double-buffered) at the default 2 MiB block;
            # raise the scoped limit so v5e's 16 MiB default is never the wall
            # while staying well under v7x's 64 MiB physical VMEM.
            vmem_limit_bytes=32 * 1024 * 1024),
    )(x2)
    return out2.reshape(C, H, W)


if __name__ == "__main__":
    key = jax.random.PRNGKey(0)
    H, W = 16, 16
    # RGBD image; depth channel includes negative values (Midas inverse depth).
    image = jax.random.normal(key, (4, H, W), dtype=jnp.float32) * 5.0

    max_depth = 10.0
    min_depth = 0.01

    # clamp_max_before_scale = True branch (force the Pallas path at this tiny size).
    out = depth_norm(image, max_depth, True, min_depth, min_pallas_bytes=0)
    out = jax.block_until_ready(out)
    ref = _depth_norm_jnp(image, max_depth, True, min_depth)
    assert out.shape == (4, H, W)
    assert out.dtype == image.dtype
    assert jnp.allclose(out, ref, atol=1e-6, rtol=1e-6)

    # clamp_max_before_scale = False branch.
    out2 = depth_norm(image, max_depth, False, min_depth, min_pallas_bytes=0)
    out2 = jax.block_until_ready(out2)
    ref2 = _depth_norm_jnp(image, max_depth, False, min_depth)
    assert jnp.allclose(out2, ref2, atol=1e-6, rtol=1e-6)

    print("KERNEL_OK")
</pallas_src>

<mosaic_0001>
module attributes {stable_mosaic.version = 11 : i64} {
  func.func @_depthnorm_kernel(%arg0: i32, %arg1: memref<4x128xf32, #tpu.memory_space<vmem>>, %arg2: memref<4x128xf32, #tpu.memory_space<vmem>>) attributes {dimension_semantics = [#tpu.dimension_semantics<parallel>], iteration_bounds = array<i64: 2>, scalar_prefetch = 0 : i64, scratch_operands = 0 : i64, tpu.core_type = #tpu.core_type<tc>, window_params = [{transform_indices = @transform_0, window_bounds = array<i64: 4, 128>}, {transform_indices = @transform_1, window_bounds = array<i64: 4, 128>}]} {
    %c0 = arith.constant 0 : index
    %c0_0 = arith.constant 0 : index
    %0 = vector.load %arg1[%c0, %c0_0] : memref<4x128xf32, #tpu.memory_space<vmem>>, vector<4x128xf32>
    %cst = arith.constant 0.00999999977 : f32
    %1 = vector.broadcast %cst : f32 to vector<4x128xf32>
    %2 = arith.maximumf %0, %1 : vector<4x128xf32>
    %cst_1 = arith.constant 1.000000e+01 : f32
    %3 = vector.broadcast %cst_1 : f32 to vector<4x128xf32>
    %4 = arith.minimumf %2, %3 : vector<4x128xf32>
    %cst_2 = arith.constant 1.000000e+01 : f32
    %5 = vector.broadcast %cst_2 : f32 to vector<4x128xf32>
    %6 = arith.divf %4, %5 : vector<4x128xf32>
    %7 = tpu.iota {dimensions = array<i32: 0>} : vector<4x128xi32>
    %c3_i32 = arith.constant 3 : i32
    %8 = vector.broadcast %c3_i32 : i32 to vector<4x128xi32>
    %9 = arith.cmpi eq, %7, %8 : vector<4x128xi32>
    %10 = arith.select %9, %6, %0 : vector<4x128xi1>, vector<4x128xf32>
    %c0_3 = arith.constant 0 : index
    %c0_4 = arith.constant 0 : index
    %11 = vector.load %arg2[%c0_3, %c0_4] : memref<4x128xf32, #tpu.memory_space<vmem>>, vector<4x128xf32>
    tpu.vector_store %arg2[%c0_3, %c0_4], %10 {strides = array<i32>} : memref<4x128xf32, #tpu.memory_space<vmem>>, vector<4x128xf32>,
    return
  }
  func.func @transform_0(%arg0: i32) -> (i32, i32) {
    %c0_i32 = arith.constant 0 : i32
    %c0_i32_0 = arith.constant 0 : i32
    return %c0_i32, %arg0 : i32, i32
  }
  func.func @transform_1(%arg0: i32) -> (i32, i32) {
    %c0_i32 = arith.constant 0 : i32
    %c0_i32_0 = arith.constant 0 : i32
    return %c0_i32, %arg0 : i32, i32
  }
}

</mosaic_0001>

<bundles_post_ra>
// kernel: tpu_custom_call.1
= control target key start
LH: loop header
LB: loop body
LE: loop exit
PB: predicated region body
PF: predicated region fallthrough
CT: control target
= control target key end

     0   :  { %6 = vsyncpa [#allocation3], 0  ;;  %s555_s0 = inlined_call_operand.hbm [shape: f32[4,256], index: 0, kind: input, shape index: {}]   ;;  %s556_s1 = inlined_call_operand.hbm [shape: f32[4,256], index: 1, kind: output, shape index: {}]  }
   0x1   :  { %8 = vsyncpa [#allocation3 + $0x1], 0 }
   0x2   :  { %9 = vsyncpa [#allocation4], 0 }
   0x3   :  { %11 = vsyncpa [#allocation4 + $0x1], 0  ;;  %s394_s6 = smov 0   ;;  %s396_s7 = smov 0  }
   0x4   :  { %s398_s8 = smov 0   ;;  %s400_s9 = smov 0  }
   0x5 LB: > { %s415_s10 = sadd.s32 4294967295, %s380_s9   ;;  %s226_s11 = sadd.s32 4294967294, %s380_s9   ;;  %s380_s9 = sphi %s400_s9, %s571_s9   ;;  %s376_s8 = sphi %s398_s8, %s570_s8   ;;  %s372_s7 = sphi %s396_s7, %s569_s7   ;;  %s368_s6 = sphi %s394_s6, %s568_s6  }
   0x6   : > { %s419_s12 = sadd.s32 1, %s380_s9   ;;  %s24_s13 = sadd.s32 1, %s376_s8 }
   0x7   : > { %s21_s14 = ssub.s32 %s380_s9, %s419_s12  ;;  %p31_p0 = scmp.ne.s32.totalorder %s376_s8, %s372_s7 }
   0x8   : > { %p22_p1 = scmp.eq.s32.totalorder %s21_s14, 0  ;;  %p32_p2 = scmp.eq.s32.totalorder %s380_s9, 0 }
   0x9   : > { %p37_p3 = scmp.ne.s32.totalorder %s372_s7, %s368_s6  ;;  %p38_p4 = scmp.eq.s32.totalorder %s415_s10, 0 }
   0xa   : > { %s431_s15 = scalar_select %p22_p1, %s376_s8, %s24_s13  }
   0xb   : > { %p433_p5 = por %p32_p2, %p31_p0  ;;  %p437_p6 = por %p38_p4, %p37_p3 }
   0xc   : > { %p61_p7 = scmp.eq.s32.totalorder %s415_s10, 1  ;;  %p67_p8 = scmp.eq.s32.totalorder %s226_s11, 1 }
   0xd   : > { %p250_p10 = scmp.lt.s32.totalorder %s380_s9, 2  ;;  %s87_s20 = sand.u32 1, %s376_s8  }
   0xe   : > { %p444_p11 = por %p61_p7, %p31_p0  ;;  %p448_p12 = por %p67_p8, %p37_p3 }
   0xf   : > { %s230_s21 = sshll.u32 %s380_s9, 6  ;;  %s229_s22 = sshll.u32 %s87_s20, 2 }
  0x10   : > { %s560_s18 = scalar_select %p444_p11, 1, 0 }
  0x11   : > { %s561_s19 = scalar_select %p448_p12, 1, 0 }
  0x12   : > { %s457_s25 = scalar_lea.hbm %s555_s0, %s230_s21  ;;  %s91_s26 = scalar_lea.vmem [#allocation2], %s229_s22 }
  0x13   : > { %s98_s27 = sshll.u32 %s91_s26, 4  ;;  %p461_p13 = pnand %p250_p10, %p433_p5  ;;  %s465_s27 = int_to_ptr.vmem [resolvable:$true] %s98_s27 }
  0x14   : > { %s88_s29 = scalar_lea.sflag [#allocation3], %s87_s20  ;;  %s284_s30 = scalar_lea.hbm %s457_s25, 64 }
  0x15   : > { %p285_p2 = scmp.ne.s32.totalorder %s457_s25, %s284_s30  ;;  %p286_p3 = pneg %p461_p13 }
  0x16   : > { %s289_s4 = scalar_lea.hbm %s555_s0, 128  ;;  %p290_p5 = scmp.lt.u32.totalorder %s457_s25, %s555_s0 }
  0x17   : > { %p287_p4 = pnand %p286_p3, %p285_p2  ;;  %p291_p8 = scmp.lt.u32.totalorder %s289_s4, %s284_s30 }
  0x18   : > { %p293_p9 = scmp.lt.u32.totalorder %s284_s30, %s457_s25 }
  0x19   : > { %p288_p7 = pneg %p287_p4  ;;  %p292_p10 = por %p291_p8, %p290_p5 }
  0x1b   : > { %p294_p0 = por %p293_p9, %p292_p10 }
  0x1d   : > { %p295_p1 = pnand %p294_p0, %p288_p7 }
  0x1f   : > { %298 = shalt.err (!%p295_p1)
}
  0x20   : > { %s299_s13 = scalar_lea.vmem %s465_s27, 64  ;;  %s382_s14 = smov [#allocation2]  }
  0x21   : > { %p300_p2 = scmp.ne.s32.totalorder %s465_s27, %s299_s13  ;;  %s304_s16 = sshll.u32 %s382_s14, 4  ;;  %s305_s16 = int_to_ptr.vmem [resolvable:$false] %s304_s16 }
  0x22   : > { %s306_s20 = scalar_lea.vmem %s305_s16, 128  ;;  %p307_p11 = scmp.lt.s32.totalorder %s465_s27, %s305_s16 }
  0x23   : > { %p302_p4 = pnand %p300_p2, %p286_p3  ;;  %p308_p5 = scmp.lt.s32.totalorder %s306_s20, %s299_s13 }
  0x25   : > { %p303_p12 = pneg %p302_p4  ;;  %p309_p8 = por %p308_p5, %p307_p11 }
  0x27   : > { %p310_p9 = pnand %p309_p8, %p303_p12 }
  0x29   : > { %313 = shalt.err (!%p310_p9)
}
  0x2a   : > { %245 = dma.hbm_to_vmem [thread:$0]  (!%p461_p13), %s457_s25, 64, %s465_s27, %s88_s29  }
  0x2b   : > { %p563_p0 = scmp.lt.s32.totalorder %s380_s9, 3  ;;  %p564_p1 = scmp.ge.s32.totalorder %s380_s9, 1 }
  0x2d   : > { %p104_p3 = pnand %p564_p1, %p563_p0 }
  0x2e   : > { %s499_s21 = sand.u32 (!%p104_p3), 1, %s372_s7  }
  0x2f   : > { %107 = sbr.rel (%p104_p3) target bundleno = 81 (0x51), region = 24  ;;  %s232_s22 = sshll.u32 (!%p104_p3), %s499_s21, 2 }
  0x30   : > { %s110_s23 = scalar_lea.sflag (!%p104_p3), [#allocation3], %s499_s21  ;;  %s113_s24 = scalar_lea.vmem (!%p104_p3), [#allocation2], %s232_s22 }
  0x36   : > { %359 = dma.done.wait (%p437_p6), %s110_s23, 64  }
  0x37   : > { %361 = vsyncadd (%p437_p6), %s110_s23, 4294967232  ;;  %v137_v0 = vlaneseq  ;;  %v132_v1 = vld [vmem:[%s113_s24] sm:$0xf]  ;;  %s131_s25 = scalar_lea.vmem [#allocation5], %s232_s22  ;;  %s235_s27 = sshll.u32 %s415_s10, 6 }
  0x38   : > { %v133_v3 = vmax.f32 %v132_v1, 0.01  ;;  %s156_s26 = sshll.u32 %s131_s25, 4  ;;  %s513_s17 = scalar_lea.hbm %s556_s1, %s235_s27  ;;  %s508_s26 = int_to_ptr.vmem [resolvable:$true] %s156_s26 }
  0x39   : > { %v138_v2 = vshrl.u32 %v137_v0, 7  ;;  %s143_s30 = scalar_lea.sflag [#allocation4], %s499_s21  ;;  %s314_s2 = scalar_lea.vmem %s508_s26, 64 }
  0x3a   : > { %v134_v4 = vmin.f32 %v133_v3, 10.0  ;;  %p315_p6 = scmp.ne.s32.totalorder %s508_s26, %s314_s2  ;;  %p565_p11 = scmp.ne.s32.totalorder %s560_s18, 0 }
  0x3b   : > { %vm139_vm0 = vcmp.eq.s32.totalorder %v138_v2, 3  ;;  %s383_s10 = smov [#allocation5]  }
  0x3c   : > { %v136_v5 = vmul.f32 0.1, %v134_v4  ;;  %p316_p12 = pnand %p315_p6, %p565_p11  ;;  %s318_s3 = sshll.u32 %s383_s10, 4  ;;  %s319_s3 = int_to_ptr.vmem [resolvable:$false] %s318_s3 }
  0x3d   : > { %s320_s4 = scalar_lea.vmem %s319_s3, 128  ;;  %p321_p7 = scmp.lt.s32.totalorder %s508_s26, %s319_s3 }
  0x3e   : > { %v140_v6 = vsel %vm139_vm0, %v136_v5, %v132_v1  ;;  %p317_p13 = pneg %p316_p12  ;;  %p322_p10 = scmp.lt.s32.totalorder %s320_s4, %s314_s2 }
  0x3f   : > { %141 = vst [vmem:[%s131_s25] sm:$0xf] %v140_v6 }
  0x40   : > { %p323_p2 = por %p322_p10, %p321_p7 }
  0x42   : > { %p324_p4 = pnand %p323_p2, %p317_p13 }
  0x44   : > { %327 = shalt.err (!%p324_p4)
}
  0x45   : > { %s328_s5 = scalar_lea.hbm %s513_s17, 64  ;;  %s332_s14 = scalar_lea.hbm %s556_s1, 128 }
  0x46   : > { %p329_p5 = scmp.ne.s32.totalorder %s513_s17, %s328_s5  ;;  %p333_p0 = scmp.lt.u32.totalorder %s513_s17, %s556_s1 }
  0x47   : > { %p334_p1 = scmp.lt.u32.totalorder %s332_s14, %s328_s5  ;;  %p336_p6 = scmp.lt.u32.totalorder %s328_s5, %s513_s17 }
  0x48   : > { %p330_p8 = pnand %p329_p5, %p565_p11 }
  0x49   : > { %p335_p3 = por %p334_p1, %p333_p0 }
  0x4a   : > { %p331_p9 = pneg %p330_p8 }
  0x4b   : > { %p337_p12 = por %p336_p6, %p335_p3 }
  0x4d   : > { %p338_p13 = pnand %p337_p12, %p331_p9 }
  0x4f   : > { %341 = shalt.err (!%p338_p13)
}
  0x50   : > { %240 = dma.vmem_to_hbm [thread:$0]  (%p565_p11), %s508_s26, 64, %s513_s17, %s143_s30  }
  0x51 PF: > { %s168_s21 = sand.u32 1, %s368_s6   ;;  %p566_p7 = scmp.ne.s32.totalorder %s561_s19, 0 }
  0x52   : > { %p567_p10 = scmp.ge.s32.totalorder %s380_s9, 2  ;;  %s169_s22 = scalar_lea.sflag [#allocation4], %s168_s21 }
  0x54   : > { %p247_p2 = pnand %p567_p10, %p566_p7 }
  0x56   : > { %363 = dma.done.wait (!%p247_p2), %s169_s22, 64  }
  0x57   : > { %365 = vsyncadd (!%p247_p2), %s169_s22, 4294967232  ;;  %p14_p4 = scmp.ge.s32.totalorder %s419_s12, 4   ;;  %s568_s6 = smov %s372_s7 }
  0x58   : > { %s569_s7 = smov %s376_s8  ;;  %s570_s8 = smov %s431_s15 }
  0x59   : > { %s571_s9 = smov %s419_s12  ;;  %16 = sbr.rel (!%p14_p4) target bundleno = 5 (0x5), region = 69 }
  0x60   :  { %174 = vsyncpa [#allocation3], 1 }
  0x61   :  { %176 = vsyncpa [#allocation3 + $0x1], 1 }
  0x62   :  { %177 = vsyncpa [#allocation4], 1 }
  0x63   :  { %179 = vsyncpa [#allocation4 + $0x1], 1 }

</bundles_post_ra>
